<compile_context>
chip_gen: v7x
topology: tpu7x:2x2x1
jax: 0.10.0
libtpu: 0.0.40
codegen_flags: <defaults>
</compile_context>

<pallas_src>
import functools

import jax
import jax.numpy as jnp
from jax import lax
from jax.experimental import pallas as pl
from jax.experimental.pallas import tpu as pltpu


# --------------------------------- helpers ---------------------------------
def _round_up(x, m):
    return (x + m - 1) // m * m


def _pad_axis(a, axis, target):
    pad = target - a.shape[axis]
    if pad == 0:
        return a
    widths = [(0, 0)] * a.ndim
    widths[axis] = (0, pad)
    return jnp.pad(a, widths)


def _pick_tile(dim, prefs):
    for p in prefs:
        if dim % p == 0:
            return p
    return dim


def _pick_batch_tile(B, Tc, Ep, Hp, budget=24 * 1024 * 1024):
    # Double-buffered x/out blocks + resident fused weight must fit VMEM.
    for bc in (8, 4, 2, 1):
        if B % bc:
            continue
        est = (2 * bc * Tc * (Ep + Hp) * 2      # x (bf16) + out (bf16), 2 buffers
               + 2 * Ep * 3 * Hp * 2            # fused weight (bf16)
               + bc * Hp * 4)                   # carry scratch (f32)
        if est <= budget:
            return bc
    return 1


# --------------------------- MinLSTM layer kernel ---------------------------
def minlstm_kernel(x_ref, w_ref, bias_ref, o_ref, h_carry):
    # x_ref block: (Bc, Tc, Ep) bf16 for one (batch-chunk, time-chunk) tile.
    @pl.when(pl.program_id(1) == 0)
    def _():
        h_carry[...] = jnp.zeros_like(h_carry)

    Bc, Tc, _ = x_ref.shape
    Hp = o_ref.shape[2]
    w = w_ref[...]                                                # (Ep, 3Hp) bf16
    bias = bias_ref[...]                                          # (1, 3Hp) f32
    row = lax.broadcasted_iota(jnp.int32, (Tc, Hp), 0)

    # Static unroll over the Bc batch rows in this block: the next row's MXU
    # gate matmul overlaps the current row's VPU/XLU scan under the scheduler.
    for bi in range(Bc):
        # Fused gate matmul: one (Tc, Ep) @ (Ep, 3Hp) MXU pass, f32 accumulation.
        s = jnp.dot(x_ref[bi], w, preferred_element_type=jnp.float32) + bias
        f = jax.nn.sigmoid(s[:, :Hp])
        i = jax.nn.sigmoid(s[:, Hp:2 * Hp])
        g = s[:, 2 * Hp:]

        # f' = f/(f+i);  i' = 1 - f';  h_t = f'_t * h_{t-1} + i'_t * g_t
        a = f * pl.reciprocal(f + i, approx=True)                 # decay  (Tc, Hp)
        b = (1.0 - a) * g                                         # input  (Tc, Hp)

        # Hillis-Steele parallel scan of the affine maps h -> a*h + b over the
        # chunk (log2(Tc) full-tile steps instead of Tc serial sublane updates).
        d = 1
        while d < Tc:
            a_prev = jnp.where(row < d, 1.0, pltpu.roll(a, d, axis=0))
            b_prev = jnp.where(row < d, 0.0, pltpu.roll(b, d, axis=0))
            b = a * b_prev + b
            a = a * a_prev
            d *= 2

        # Fold in the carry from the previous time chunk; one dense block store.
        h = b + a * h_carry[pl.ds(bi, 1), :]
        h_carry[pl.ds(bi, 1), :] = h[Tc - 1:Tc, :]
        o_ref[bi] = h.astype(o_ref.dtype)


def minlstm_layer(x, w3, b3, hidden_pad):
    B, T_pad, E_pad = x.shape
    Tc = _pick_tile(T_pad, (256, 128, 64, 32, 16, 8))
    Bc = _pick_batch_tile(B, Tc, E_pad, hidden_pad)
    return pl.pallas_call(
        minlstm_kernel,
        out_shape=jax.ShapeDtypeStruct((B, T_pad, hidden_pad), jnp.bfloat16),
        grid_spec=pltpu.PrefetchScalarGridSpec(
            num_scalar_prefetch=0,
            grid=(B // Bc, T_pad // Tc),
            in_specs=[
                pl.BlockSpec((Bc, Tc, E_pad), lambda b, t: (b, t, 0)),
                pl.BlockSpec((E_pad, 3 * hidden_pad), lambda b, t: (0, 0)),
                pl.BlockSpec((1, 3 * hidden_pad), lambda b, t: (0, 0)),
            ],
            out_specs=pl.BlockSpec((Bc, Tc, hidden_pad), lambda b, t: (b, t, 0)),
            scratch_shapes=[pltpu.VMEM((Bc, hidden_pad), jnp.float32)],
        ),
        compiler_params=pltpu.CompilerParams(
            dimension_semantics=("parallel", "arbitrary")),
    )(x, w3, b3)


# ------------------------------ Final fc kernel ------------------------------
def linear_kernel(x_ref, w_ref, b_ref, o_ref):
    o_ref[...] = (jnp.dot(x_ref[...], w_ref[...],
                          preferred_element_type=jnp.float32) + b_ref[...])


def linear_layer(x2d, w, b):
    M, H_pad = x2d.shape
    V_pad = w.shape[1]
    tm = _pick_tile(M, (256, 128, 64, 32, 16, 8))
    tv = _pick_tile(V_pad, (512, 256, 128))
    return pl.pallas_call(
        linear_kernel,
        out_shape=jax.ShapeDtypeStruct((M, V_pad), jnp.float32),
        grid_spec=pltpu.PrefetchScalarGridSpec(
            num_scalar_prefetch=0,
            grid=(M // tm, V_pad // tv),
            in_specs=[
                pl.BlockSpec((tm, H_pad), lambda i, j: (i, 0)),
                pl.BlockSpec((H_pad, tv), lambda i, j: (0, j)),
                pl.BlockSpec((1, tv), lambda i, j: (0, j)),
            ],
            out_specs=pl.BlockSpec((tm, tv), lambda i, j: (i, j)),
        ),
        compiler_params=pltpu.CompilerParams(
            dimension_semantics=("parallel", "parallel")),
    )(x2d, w, b)


# ----------------------------- Model forward pass -----------------------------
def language_model_forward(tokens, params):
    emb = params["emb"]
    V, E = emb.shape
    H = params["layers"][0]["wf"].shape[1]
    B, T = tokens.shape
    Ep = _round_up(E, 128)
    Hp = _round_up(H, 128)
    Vp = _round_up(V, 128)
    Tp = _round_up(T, 8)
    assert Ep == Hp, "reference forward requires E == H"

    # TODO(synk): embedding gather kept in plain JAX (no clean tiled gather path).
    x = jnp.take(emb.astype(jnp.bfloat16), tokens, axis=0)         # (B, T, E)
    x = _pad_axis(_pad_axis(x, 2, Ep), 1, Tp)                      # (B, Tp, Ep)

    for layer in params["layers"]:
        # Fuse Wf|Wi|Wh -> (Ep, 3Hp) bf16, biases -> (1, 3Hp) f32, zero-padded
        # so padded lanes stay exactly zero through the recurrence.
        w3 = jnp.concatenate(
            [_pad_axis(_pad_axis(layer[k].astype(jnp.bfloat16), 0, Ep), 1, Hp)
             for k in ("wf", "wi", "wh")], axis=1)
        b3 = jnp.concatenate(
            [_pad_axis(layer[k], 1, Hp) for k in ("bf", "bi", "bh")], axis=1)
        x = minlstm_layer(x, w3, b3, Hp)                           # (B, Tp, Hp) bf16

    wo = _pad_axis(_pad_axis(params["wo"].astype(jnp.bfloat16), 0, Hp), 1, Vp)
    bo = _pad_axis(params["bo"], 1, Vp)
    logits = linear_layer(x.reshape(B * Tp, Hp), wo, bo)           # (B*Tp, Vp) f32
    return logits.reshape(B, Tp, Vp)[:, :T, :V]


# ------------------- Pure-JAX reference (mirrors bf16 casts) -------------------
def language_model_ref(tokens, params):
    # Mirrors the kernel's bf16 quantization of matmul operands / inter-layer
    # activations; recurrence math in f32; sequential scan.
    q = lambda a: a.astype(jnp.bfloat16).astype(jnp.float32)
    x = jnp.take(q(params["emb"]), tokens, axis=0)
    B, T, _ = x.shape
    for layer in params["layers"]:
        f = jax.nn.sigmoid(x @ q(layer["wf"]) + layer["bf"])
        i = jax.nn.sigmoid(x @ q(layer["wi"]) + layer["bi"])
        g = x @ q(layer["wh"]) + layer["bh"]
        fp = f / (f + i)
        ip = i / (f + i)
        H = layer["wf"].shape[1]
        h = jnp.zeros((B, H), jnp.float32)
        outs = []
        for t in range(T):
            h = fp[:, t] * h + ip[:, t] * g[:, t]
            outs.append(h)
        x = q(jnp.stack(outs, axis=1))
    return x @ q(params["wo"]) + params["bo"]


# ----------------------------------- Params ------------------------------------
def init_params(key, vocab_size, embed_size, hidden_size, num_layers):
    assert embed_size == hidden_size, "reference forward requires E == H"
    keys = jax.random.split(key, 2 + 7 * num_layers)
    k = iter(keys)
    params = {
        "emb": jax.random.normal(next(k), (vocab_size, embed_size), jnp.float32),
        "layers": [],
    }
    scale_in = 1.0 / jnp.sqrt(embed_size)
    for _ in range(num_layers):
        layer = {
            "wf": jax.random.uniform(next(k), (embed_size, hidden_size),
                                     jnp.float32, -scale_in, scale_in),
            "wi": jax.random.uniform(next(k), (embed_size, hidden_size),
                                     jnp.float32, -scale_in, scale_in),
            "wh": jax.random.uniform(next(k), (embed_size, hidden_size),
                                     jnp.float32, -scale_in, scale_in),
            "bf": jax.random.uniform(next(k), (1, hidden_size),
                                     jnp.float32, -scale_in, scale_in),
            "bi": jax.random.uniform(next(k), (1, hidden_size),
                                     jnp.float32, -scale_in, scale_in),
            "bh": jax.random.uniform(next(k), (1, hidden_size),
                                     jnp.float32, -scale_in, scale_in),
        }
        params["layers"].append(layer)
    scale_h = 1.0 / jnp.sqrt(hidden_size)
    params["wo"] = jax.random.uniform(next(k), (hidden_size, vocab_size),
                                      jnp.float32, -scale_h, scale_h)
    params["bo"] = jax.random.uniform(next(k), (1, vocab_size),
                                      jnp.float32, -scale_h, scale_h)
    return params


if __name__ == "__main__":
    vocab_size = 64
    embed_size = 32
    hidden_size = 32
    num_layers = 2
    B, T = 2, 8

    key = jax.random.PRNGKey(0)
    pkey, tkey = jax.random.split(key)
    params = init_params(pkey, vocab_size, embed_size, hidden_size, num_layers)
    tokens = jax.random.randint(tkey, (B, T), 0, vocab_size, dtype=jnp.int32)

    fwd = jax.jit(functools.partial(language_model_forward, params=params))
    out = jax.block_until_ready(fwd(tokens))

    ref = language_model_ref(tokens, params)
    assert out.shape == (B, T, vocab_size)
    max_err = float(jnp.max(jnp.abs(out - ref)))
    # Tolerance covers the approx-reciprocal + MXU accumulation-order differences
    # (bf16 quantization itself is mirrored by the reference).
    assert jnp.allclose(out, ref, atol=2e-2, rtol=2e-2), \
        f"mismatch vs reference (max abs err {max_err})"

    print("KERNEL_OK")
</pallas_src>

<mosaic_0001>
module attributes {stable_mosaic.version = 11 : i64} {
  func.func @linear_kernel(%arg0: i32, %arg1: i32, %arg2: memref<16x128xbf16, #tpu.memory_space<vmem>>, %arg3: memref<128x128xbf16, #tpu.memory_space<vmem>>, %arg4: memref<1x128xf32, #tpu.memory_space<vmem>>, %arg5: memref<16x128xf32, #tpu.memory_space<vmem>>) attributes {dimension_semantics = [#tpu.dimension_semantics<parallel>, #tpu.dimension_semantics<parallel>], iteration_bounds = array<i64: 1, 1>, scalar_prefetch = 0 : i64, scratch_operands = 0 : i64, tpu.core_type = #tpu.core_type<tc>, window_params = [{transform_indices = @transform_0, window_bounds = array<i64: 16, 128>}, {transform_indices = @transform_1, window_bounds = array<i64: 128, 128>}, {transform_indices = @transform_2, window_bounds = array<i64: 1, 128>}, {transform_indices = @transform_3, window_bounds = array<i64: 16, 128>}]} {
    %c0 = arith.constant 0 : index
    %c0_0 = arith.constant 0 : index
    %0 = vector.load %arg2[%c0, %c0_0] : memref<16x128xbf16, #tpu.memory_space<vmem>>, vector<16x128xbf16>
    %c0_1 = arith.constant 0 : index
    %c0_2 = arith.constant 0 : index
    %1 = vector.load %arg3[%c0_1, %c0_2] : memref<128x128xbf16, #tpu.memory_space<vmem>>, vector<128x128xbf16>
    %cst = arith.constant dense<0.000000e+00> : vector<16x128xf32>
    %2 = tpu.matmul %0, %1, %cst {dimension_numbers = #tpu.dot_dimension_numbers<[1], [0], [0], [1], [0, 0, 1, 1], [], []>} : vector<16x128xbf16>, vector<128x128xbf16>, vector<16x128xf32> -> vector<16x128xf32>
    %c0_3 = arith.constant 0 : index
    %c0_4 = arith.constant 0 : index
    %3 = vector.load %arg4[%c0_3, %c0_4] : memref<1x128xf32, #tpu.memory_space<vmem>>, vector<1x128xf32>
    %4 = vector.broadcast %3 : vector<1x128xf32> to vector<16x128xf32>
    %5 = arith.addf %2, %4 : vector<16x128xf32>
    %c0_5 = arith.constant 0 : index
    %c0_6 = arith.constant 0 : index
    %6 = vector.load %arg5[%c0_5, %c0_6] : memref<16x128xf32, #tpu.memory_space<vmem>>, vector<16x128xf32>
    tpu.vector_store %arg5[%c0_5, %c0_6], %5 {strides = array<i32>} : memref<16x128xf32, #tpu.memory_space<vmem>>, vector<16x128xf32>,
    return
  }
  func.func @transform_0(%arg0: i32, %arg1: i32) -> (i32, i32) {
    %c0_i32 = arith.constant 0 : i32
    %c0_i32_0 = arith.constant 0 : i32
    return %arg0, %c0_i32 : i32, i32
  }
  func.func @transform_1(%arg0: i32, %arg1: i32) -> (i32, i32) {
    %c0_i32 = arith.constant 0 : i32
    %c0_i32_0 = arith.constant 0 : i32
    return %c0_i32, %arg1 : i32, i32
  }
  func.func @transform_2(%arg0: i32, %arg1: i32) -> (i32, i32) {
    %c0_i32 = arith.constant 0 : i32
    %c0_i32_0 = arith.constant 0 : i32
    return %c0_i32, %arg1 : i32, i32
  }
  func.func @transform_3(%arg0: i32, %arg1: i32) -> (i32, i32) {
    %c0_i32 = arith.constant 0 : i32
    return %arg0, %arg1 : i32, i32
  }
}

module attributes {stable_mosaic.version = 11 : i64} {
  func.func @minlstm_kernel(%arg0: i32, %arg1: i32, %arg2: memref<2x8x128xbf16, #tpu.memory_space<vmem>>, %arg3: memref<128x384xbf16, #tpu.memory_space<vmem>>, %arg4: memref<1x384xf32, #tpu.memory_space<vmem>>, %arg5: memref<2x8x128xbf16, #tpu.memory_space<vmem>>, %arg6: memref<2x128xf32, #tpu.memory_space<vmem>>) attributes {dimension_semantics = [#tpu.dimension_semantics<parallel>, #tpu.dimension_semantics<arbitrary>], iteration_bounds = array<i64: 1, 1>, scalar_prefetch = 0 : i64, scratch_operands = 1 : i64, tpu.core_type = #tpu.core_type<tc>, window_params = [{transform_indices = @transform_0, window_bounds = array<i64: 2, 8, 128>}, {pipeline_mode = #tpu.pipeline_mode<synchronous>, transform_indices = @transform_1, window_bounds = array<i64: 128, 384>}, {pipeline_mode = #tpu.pipeline_mode<synchronous>, transform_indices = @transform_2, window_bounds = array<i64: 1, 384>}, {transform_indices = @transform_3, window_bounds = array<i64: 2, 8, 128>}]} {
    %c0_i32 = arith.constant 0 : i32
    %0 = arith.cmpi eq, %arg1, %c0_i32 : i32
    %1 = arith.extui %0 : i1 to i32
    %c0_i32_0 = arith.constant 0 : i32
    %2 = arith.cmpi ne, %1, %c0_i32_0 : i32
    scf.if %2 {
      %cst_63 = arith.constant 0.000000e+00 : f32
      %152 = vector.broadcast %cst_63 : f32 to vector<2x128xf32>
      %c0_64 = arith.constant 0 : index
      %c0_65 = arith.constant 0 : index
      %153 = vector.load %arg6[%c0_64, %c0_65] : memref<2x128xf32, #tpu.memory_space<vmem>>, vector<2x128xf32>
      tpu.vector_store %arg6[%c0_64, %c0_65], %152 {strides = array<i32>} : memref<2x128xf32, #tpu.memory_space<vmem>>, vector<2x128xf32>,
    } else {
    }
    %c0 = arith.constant 0 : index
    %c0_1 = arith.constant 0 : index
    %3 = vector.load %arg3[%c0, %c0_1] : memref<128x384xbf16, #tpu.memory_space<vmem>>, vector<128x384xbf16>
    %c0_2 = arith.constant 0 : index
    %c0_3 = arith.constant 0 : index
    %4 = vector.load %arg4[%c0_2, %c0_3] : memref<1x384xf32, #tpu.memory_space<vmem>>, vector<1x384xf32>
    %5 = tpu.iota {dimensions = array<i32: 0>} : vector<8x128xi32>
    %c0_4 = arith.constant 0 : index
    %c0_5 = arith.constant 0 : index
    %c0_6 = arith.constant 0 : index
    %6 = vector.load %arg2[%c0_4, %c0_5, %c0_6] : memref<2x8x128xbf16, #tpu.memory_space<vmem>>, vector<1x8x128xbf16>
    %7 = vector.shape_cast %6 : vector<1x8x128xbf16> to vector<8x128xbf16>
    %cst = arith.constant dense<0.000000e+00> : vector<8x384xf32>
    %8 = tpu.matmul %7, %3, %cst {dimension_numbers = #tpu.dot_dimension_numbers<[1], [0], [0], [1], [0, 0, 1, 1], [], []>} : vector<8x128xbf16>, vector<128x384xbf16>, vector<8x384xf32> -> vector<8x384xf32>
    %9 = vector.broadcast %4 : vector<1x384xf32> to vector<8x384xf32>
    %10 = arith.addf %8, %9 : vector<8x384xf32>
    %11 = vector.extract_strided_slice %10 {offsets = [0, 0], sizes = [8, 128], strides = [1, 1]} : vector<8x384xf32> to vector<8x128xf32>
    %12 = arith.negf %11 : vector<8x128xf32>
    %13 = math.exp %12 : vector<8x128xf32>
    %cst_7 = arith.constant 1.000000e+00 : f32
    %14 = vector.broadcast %cst_7 : f32 to vector<8x128xf32>
    %15 = arith.addf %14, %13 : vector<8x128xf32>
    %16 = arith.divf %14, %15 : vector<8x128xf32>
    %17 = vector.extract_strided_slice %10 {offsets = [0, 128], sizes = [8, 128], strides = [1, 1]} : vector<8x384xf32> to vector<8x128xf32>
    %18 = arith.negf %17 : vector<8x128xf32>
    %19 = math.exp %18 : vector<8x128xf32>
    %cst_8 = arith.constant 1.000000e+00 : f32
    %20 = vector.broadcast %cst_8 : f32 to vector<8x128xf32>
    %21 = arith.addf %20, %19 : vector<8x128xf32>
    %22 = arith.divf %20, %21 : vector<8x128xf32>
    %23 = vector.extract_strided_slice %10 {offsets = [0, 256], sizes = [8, 128], strides = [1, 1]} : vector<8x384xf32> to vector<8x128xf32>
    %24 = arith.addf %16, %22 : vector<8x128xf32>
    %25 = tpu.reciprocal %24 {approx = true} : vector<8x128xf32> -> vector<8x128xf32>
    %26 = arith.mulf %16, %25 : vector<8x128xf32>
    %cst_9 = arith.constant 1.000000e+00 : f32
    %27 = vector.broadcast %cst_9 : f32 to vector<8x128xf32>
    %28 = arith.subf %27, %26 : vector<8x128xf32>
    %29 = arith.mulf %28, %23 : vector<8x128xf32>
    %c1_i32 = arith.constant 1 : i32
    %30 = vector.broadcast %c1_i32 : i32 to vector<8x128xi32>
    %31 = arith.cmpi slt, %5, %30 : vector<8x128xi32>
    %c1_i32_10 = arith.constant 1 : i32
    %32 = tpu.dynamic_rotate %26 by %c1_i32_10 dim 0 : vector<8x128xf32>, i32 -> vector<8x128xf32>
    %cst_11 = arith.constant 1.000000e+00 : f32
    %33 = vector.broadcast %cst_11 : f32 to vector<8x128xf32>
    %34 = arith.select %31, %33, %32 : vector<8x128xi1>, vector<8x128xf32>
    %c1_i32_12 = arith.constant 1 : i32
    %35 = vector.broadcast %c1_i32_12 : i32 to vector<8x128xi32>
    %36 = arith.cmpi slt, %5, %35 : vector<8x128xi32>
    %c1_i32_13 = arith.constant 1 : i32
    %37 = tpu.dynamic_rotate %29 by %c1_i32_13 dim 0 : vector<8x128xf32>, i32 -> vector<8x128xf32>
    %cst_14 = arith.constant 0.000000e+00 : f32
    %38 = vector.broadcast %cst_14 : f32 to vector<8x128xf32>
    %39 = arith.select %36, %38, %37 : vector<8x128xi1>, vector<8x128xf32>
    %40 = arith.mulf %26, %39 : vector<8x128xf32>
    %41 = arith.addf %40, %29 : vector<8x128xf32>
    %42 = arith.mulf %26, %34 : vector<8x128xf32>
    %c2_i32 = arith.constant 2 : i32
    %43 = vector.broadcast %c2_i32 : i32 to vector<8x128xi32>
    %44 = arith.cmpi slt, %5, %43 : vector<8x128xi32>
    %c2_i32_15 = arith.constant 2 : i32
    %45 = tpu.dynamic_rotate %42 by %c2_i32_15 dim 0 : vector<8x128xf32>, i32 -> vector<8x128xf32>
    %cst_16 = arith.constant 1.000000e+00 : f32
    %46 = vector.broadcast %cst_16 : f32 to vector<8x128xf32>
    %47 = arith.select %44, %46, %45 : vector<8x128xi1>, vector<8x128xf32>
    %c2_i32_17 = arith.constant 2 : i32
    %48 = vector.broadcast %c2_i32_17 : i32 to vector<8x128xi32>
    %49 = arith.cmpi slt, %5, %48 : vector<8x128xi32>
    %c2_i32_18 = arith.constant 2 : i32
    %50 = tpu.dynamic_rotate %41 by %c2_i32_18 dim 0 : vector<8x128xf32>, i32 -> vector<8x128xf32>
    %cst_19 = arith.constant 0.000000e+00 : f32
    %51 = vector.broadcast %cst_19 : f32 to vector<8x128xf32>
    %52 = arith.select %49, %51, %50 : vector<8x128xi1>, vector<8x128xf32>
    %53 = arith.mulf %42, %52 : vector<8x128xf32>
    %54 = arith.addf %53, %41 : vector<8x128xf32>
    %55 = arith.mulf %42, %47 : vector<8x128xf32>
    %c4_i32 = arith.constant 4 : i32
    %56 = vector.broadcast %c4_i32 : i32 to vector<8x128xi32>
    %57 = arith.cmpi slt, %5, %56 : vector<8x128xi32>
    %c4_i32_20 = arith.constant 4 : i32
    %58 = tpu.dynamic_rotate %55 by %c4_i32_20 dim 0 : vector<8x128xf32>, i32 -> vector<8x128xf32>
    %cst_21 = arith.constant 1.000000e+00 : f32
    %59 = vector.broadcast %cst_21 : f32 to vector<8x128xf32>
    %60 = arith.select %57, %59, %58 : vector<8x128xi1>, vector<8x128xf32>
    %c4_i32_22 = arith.constant 4 : i32
    %61 = vector.broadcast %c4_i32_22 : i32 to vector<8x128xi32>
    %62 = arith.cmpi slt, %5, %61 : vector<8x128xi32>
    %c4_i32_23 = arith.constant 4 : i32
    %63 = tpu.dynamic_rotate %54 by %c4_i32_23 dim 0 : vector<8x128xf32>, i32 -> vector<8x128xf32>
    %cst_24 = arith.constant 0.000000e+00 : f32
    %64 = vector.broadcast %cst_24 : f32 to vector<8x128xf32>
    %65 = arith.select %62, %64, %63 : vector<8x128xi1>, vector<8x128xf32>
    %66 = arith.mulf %55, %65 : vector<8x128xf32>
    %67 = arith.addf %66, %54 : vector<8x128xf32>
    %68 = arith.mulf %55, %60 : vector<8x128xf32>
    %c0_25 = arith.constant 0 : index
    %c0_26 = arith.constant 0 : index
    %69 = vector.load %arg6[%c0_25, %c0_26] : memref<2x128xf32, #tpu.memory_space<vmem>>, vector<1x128xf32>
    %70 = vector.broadcast %69 : vector<1x128xf32> to vector<8x128xf32>
    %71 = arith.mulf %68, %70 : vector<8x128xf32>
    %72 = arith.addf %67, %71 : vector<8x128xf32>
    %73 = vector.extract_strided_slice %72 {offsets = [7, 0], sizes = [1, 128], strides = [1, 1]} : vector<8x128xf32> to vector<1x128xf32>
    %c0_27 = arith.constant 0 : index
    %c0_28 = arith.constant 0 : index
    %74 = vector.load %arg6[%c0_27, %c0_28] : memref<2x128xf32, #tpu.memory_space<vmem>>, vector<1x128xf32>
    tpu.vector_store %arg6[%c0_27, %c0_28], %73 {strides = array<i32>} : memref<2x128xf32, #tpu.memory_space<vmem>>, vector<1x128xf32>,
    %75 = arith.truncf %72 : vector<8x128xf32> to vector<8x128xbf16>
    %c0_29 = arith.constant 0 : index
    %c0_30 = arith.constant 0 : index
    %c0_31 = arith.constant 0 : index
    %76 = vector.load %arg5[%c0_29, %c0_30, %c0_31] : memref<2x8x128xbf16, #tpu.memory_space<vmem>>, vector<1x8x128xbf16>
    %77 = vector.shape_cast %76 : vector<1x8x128xbf16> to vector<8x128xbf16>
    %78 = vector.shape_cast %75 : vector<8x128xbf16> to vector<1x8x128xbf16>
    tpu.vector_store %arg5[%c0_29, %c0_30, %c0_31], %78 {strides = array<i32>} : memref<2x8x128xbf16, #tpu.memory_space<vmem>>, vector<1x8x128xbf16>,
    %c1 = arith.constant 1 : index
    %c0_32 = arith.constant 0 : index
    %c0_33 = arith.constant 0 : index
    %79 = vector.load %arg2[%c1, %c0_32, %c0_33] : memref<2x8x128xbf16, #tpu.memory_space<vmem>>, vector<1x8x128xbf16>
    %80 = vector.shape_cast %79 : vector<1x8x128xbf16> to vector<8x128xbf16>
    %cst_34 = arith.constant dense<0.000000e+00> : vector<8x384xf32>
    %81 = tpu.matmul %80, %3, %cst_34 {dimension_numbers = #tpu.dot_dimension_numbers<[1], [0], [0], [1], [0, 0, 1, 1], [], []>} : vector<8x128xbf16>, vector<128x384xbf16>, vector<8x384xf32> -> vector<8x384xf32>
    %82 = vector.broadcast %4 : vector<1x384xf32> to vector<8x384xf32>
    %83 = arith.addf %81, %82 : vector<8x384xf32>
    %84 = vector.extract_strided_slice %83 {offsets = [0, 0], sizes = [8, 128], strides = [1, 1]} : vector<8x384xf32> to vector<8x128xf32>
    %85 = arith.negf %84 : vector<8x128xf32>
    %86 = math.exp %85 : vector<8x128xf32>
    %cst_35 = arith.constant 1.000000e+00 : f32
    %87 = vector.broadcast %cst_35 : f32 to vector<8x128xf32>
    %88 = arith.addf %87, %86 : vector<8x128xf32>
    %89 = arith.divf %87, %88 : vector<8x128xf32>
    %90 = vector.extract_strided_slice %83 {offsets = [0, 128], sizes = [8, 128], strides = [1, 1]} : vector<8x384xf32> to vector<8x128xf32>
    %91 = arith.negf %90 : vector<8x128xf32>
    %92 = math.exp %91 : vector<8x128xf32>
    %cst_36 = arith.constant 1.000000e+00 : f32
    %93 = vector.broadcast %cst_36 : f32 to vector<8x128xf32>
    %94 = arith.addf %93, %92 : vector<8x128xf32>
    %95 = arith.divf %93, %94 : vector<8x128xf32>
    %96 = vector.extract_strided_slice %83 {offsets = [0, 256], sizes = [8, 128], strides = [1, 1]} : vector<8x384xf32> to vector<8x128xf32>
    %97 = arith.addf %89, %95 : vector<8x128xf32>
    %98 = tpu.reciprocal %97 {approx = true} : vector<8x128xf32> -> vector<8x128xf32>
    %99 = arith.mulf %89, %98 : vector<8x128xf32>
    %cst_37 = arith.constant 1.000000e+00 : f32
    %100 = vector.broadcast %cst_37 : f32 to vector<8x128xf32>
    %101 = arith.subf %100, %99 : vector<8x128xf32>
    %102 = arith.mulf %101, %96 : vector<8x128xf32>
    %c1_i32_38 = arith.constant 1 : i32
    %103 = vector.broadcast %c1_i32_38 : i32 to vector<8x128xi32>
    %104 = arith.cmpi slt, %5, %103 : vector<8x128xi32>
    %c1_i32_39 = arith.constant 1 : i32
    %105 = tpu.dynamic_rotate %99 by %c1_i32_39 dim 0 : vector<8x128xf32>, i32 -> vector<8x128xf32>
    %cst_40 = arith.constant 1.000000e+00 : f32
    %106 = vector.broadcast %cst_40 : f32 to vector<8x128xf32>
    %107 = arith.select %104, %106, %105 : vector<8x128xi1>, vector<8x128xf32>
    %c1_i32_41 = arith.constant 1 : i32
    %108 = vector.broadcast %c1_i32_41 : i32 to vector<8x128xi32>
    %109 = arith.cmpi slt, %5, %108 : vector<8x128xi32>
    %c1_i32_42 = arith.constant 1 : i32
    %110 = tpu.dynamic_rotate %102 by %c1_i32_42 dim 0 : vector<8x128xf32>, i32 -> vector<8x128xf32>
    %cst_43 = arith.constant 0.000000e+00 : f32
    %111 = vector.broadcast %cst_43 : f32 to vector<8x128xf32>
    %112 = arith.select %109, %111, %110 : vector<8x128xi1>, vector<8x128xf32>
    %113 = arith.mulf %99, %112 : vector<8x128xf32>
    %114 = arith.addf %113, %102 : vector<8x128xf32>
    %115 = arith.mulf %99, %107 : vector<8x128xf32>
    %c2_i32_44 = arith.constant 2 : i32
    %116 = vector.broadcast %c2_i32_44 : i32 to vector<8x128xi32>
    %117 = arith.cmpi slt, %5, %116 : vector<8x128xi32>
    %c2_i32_45 = arith.constant 2 : i32
    %118 = tpu.dynamic_rotate %115 by %c2_i32_45 dim 0 : vector<8x128xf32>, i32 -> vector<8x128xf32>
    %cst_46 = arith.constant 1.000000e+00 : f32
    %119 = vector.broadcast %cst_46 : f32 to vector<8x128xf32>
    %120 = arith.select %117, %119, %118 : vector<8x128xi1>, vector<8x128xf32>
    %c2_i32_47 = arith.constant 2 : i32
    %121 = vector.broadcast %c2_i32_47 : i32 to vector<8x128xi32>
    %122 = arith.cmpi slt, %5, %121 : vector<8x128xi32>
    %c2_i32_48 = arith.constant 2 : i32
    %123 = tpu.dynamic_rotate %114 by %c2_i32_48 dim 0 : vector<8x128xf32>, i32 -> vector<8x128xf32>
    %cst_49 = arith.constant 0.000000e+00 : f32
    %124 = vector.broadcast %cst_49 : f32 to vector<8x128xf32>
    %125 = arith.select %122, %124, %123 : vector<8x128xi1>, vector<8x128xf32>
    %126 = arith.mulf %115, %125 : vector<8x128xf32>
    %127 = arith.addf %126, %114 : vector<8x128xf32>
    %128 = arith.mulf %115, %120 : vector<8x128xf32>
    %c4_i32_50 = arith.constant 4 : i32
    %129 = vector.broadcast %c4_i32_50 : i32 to vector<8x128xi32>
    %130 = arith.cmpi slt, %5, %129 : vector<8x128xi32>
    %c4_i32_51 = arith.constant 4 : i32
    %131 = tpu.dynamic_rotate %128 by %c4_i32_51 dim 0 : vector<8x128xf32>, i32 -> vector<8x128xf32>
    %cst_52 = arith.constant 1.000000e+00 : f32
    %132 = vector.broadcast %cst_52 : f32 to vector<8x128xf32>
    %133 = arith.select %130, %132, %131 : vector<8x128xi1>, vector<8x128xf32>
    %c4_i32_53 = arith.constant 4 : i32
    %134 = vector.broadcast %c4_i32_53 : i32 to vector<8x128xi32>
    %135 = arith.cmpi slt, %5, %134 : vector<8x128xi32>
    %c4_i32_54 = arith.constant 4 : i32
    %136 = tpu.dynamic_rotate %127 by %c4_i32_54 dim 0 : vector<8x128xf32>, i32 -> vector<8x128xf32>
    %cst_55 = arith.constant 0.000000e+00 : f32
    %137 = vector.broadcast %cst_55 : f32 to vector<8x128xf32>
    %138 = arith.select %135, %137, %136 : vector<8x128xi1>, vector<8x128xf32>
    %139 = arith.mulf %128, %138 : vector<8x128xf32>
    %140 = arith.addf %139, %127 : vector<8x128xf32>
    %141 = arith.mulf %128, %133 : vector<8x128xf32>
    %c1_56 = arith.constant 1 : index
    %c0_57 = arith.constant 0 : index
    %142 = vector.load %arg6[%c1_56, %c0_57] : memref<2x128xf32, #tpu.memory_space<vmem>>, vector<1x128xf32>
    %143 = vector.broadcast %142 : vector<1x128xf32> to vector<8x128xf32>
    %144 = arith.mulf %141, %143 : vector<8x128xf32>
    %145 = arith.addf %140, %144 : vector<8x128xf32>
    %146 = vector.extract_strided_slice %145 {offsets = [7, 0], sizes = [1, 128], strides = [1, 1]} : vector<8x128xf32> to vector<1x128xf32>
    %c1_58 = arith.constant 1 : index
    %c0_59 = arith.constant 0 : index
    %147 = vector.load %arg6[%c1_58, %c0_59] : memref<2x128xf32, #tpu.memory_space<vmem>>, vector<1x128xf32>
    tpu.vector_store %arg6[%c1_58, %c0_59], %146 {strides = array<i32>} : memref<2x128xf32, #tpu.memory_space<vmem>>, vector<1x128xf32>,
    %148 = arith.truncf %145 : vector<8x128xf32> to vector<8x128xbf16>
    %c1_60 = arith.constant 1 : index
    %c0_61 = arith.constant 0 : index
    %c0_62 = arith.constant 0 : index
    %149 = vector.load %arg5[%c1_60, %c0_61, %c0_62] : memref<2x8x128xbf16, #tpu.memory_space<vmem>>, vector<1x8x128xbf16>
    %150 = vector.shape_cast %149 : vector<1x8x128xbf16> to vector<8x128xbf16>
    %151 = vector.shape_cast %148 : vector<8x128xbf16> to vector<1x8x128xbf16>
    tpu.vector_store %arg5[%c1_60, %c0_61, %c0_62], %151 {strides = array<i32>} : memref<2x8x128xbf16, #tpu.memory_space<vmem>>, vector<1x8x128xbf16>,
    return
  }
  func.func @transform_0(%arg0: i32, %arg1: i32) -> (i32, i32, i32) {
    %c0_i32 = arith.constant 0 : i32
    %c0_i32_0 = arith.constant 0 : i32
    return %arg0, %arg1, %c0_i32 : i32, i32, i32
  }
  func.func @transform_1(%arg0: i32, %arg1: i32) -> (i32, i32) {
    %c0_i32 = arith.constant 0 : i32
    %c0_i32_0 = arith.constant 0 : i32
    %c0_i32_1 = arith.constant 0 : i32
    return %c0_i32, %c0_i32_0 : i32, i32
  }
  func.func @transform_2(%arg0: i32, %arg1: i32) -> (i32, i32) {
    %c0_i32 = arith.constant 0 : i32
    %c0_i32_0 = arith.constant 0 : i32
    %c0_i32_1 = arith.constant 0 : i32
    return %c0_i32, %c0_i32_0 : i32, i32
  }
  func.func @transform_3(%arg0: i32, %arg1: i32) -> (i32, i32, i32) {
    %c0_i32 = arith.constant 0 : i32
    %c0_i32_0 = arith.constant 0 : i32
    return %arg0, %arg1, %c0_i32 : i32, i32, i32
  }
}

</mosaic_0001>

<bundles_post_ra>
// kernel: language_model_forward.5
= control target key start
LH: loop header
LB: loop body
LE: loop exit
PB: predicated region body
PF: predicated region fallthrough
CT: control target
= control target key end

     0   :  { %v231_v1 = vmov 0.0   ;;  %vm232_vm0 = vmmov 0   ;;  %s298_s0 = inlined_call_operand.vmem [shape: bf16[16,128], index: 0, kind: input, shape index: {}]   ;;  %s299_s1 = inlined_call_operand.vmem [shape: bf16[128,128], index: 1, kind: input, shape index: {}]   ;;  %s300_s2 = inlined_call_operand.vmem [shape: f32[1,128], index: 2, kind: input, shape index: {}]   ;;  %s301_s3 = inlined_call_operand.hbm [shape: f32[16,128], index: 3, kind: output, shape index: {}]  }
   0x1   :  { %v198_v0 = vld [vmem:[%s299_s1] sm:$0xff]   ;;  %173 = vmatprep.subr.bf16.mxu0 %v231_v1  ;;  %v199_v2 = vld [vmem:[%s299_s1 + $0x8] sm:$0xff]   ;;  %189 = vmatprep.mubr.msk.bf16.mxu0 %vm232_vm0, %v231_v1  ;;  %v200_v3 = vld [vmem:[%s299_s1 + $0x10] sm:$0xff]  }
   0x2   :  { %174 = vmatpush3.bf16.msra.mxu0 %v198_v0 }
   0x3   :  { %175 = vmatprep.subr.bf16.mxu0 %v231_v1 }
   0x6   :  { %176 = vmatpush3.bf16.msra.mxu0 %v199_v2 }
   0x7   :  { %177 = vmatprep.subr.bf16.mxu0 %v231_v1 }
   0x8   :  { %8 = vsyncpa [#allocation3], 0  ;;  %v201_v4 = vld [vmem:[%s299_s1 + $0x18] sm:$0xff]   ;;  %v202_v5 = vld [vmem:[%s299_s1 + $0x20] sm:$0xff]   ;;  %s233_s5 = smov [#allocation2]  }
   0x9   :  { %v203_v6 = vld [vmem:[%s299_s1 + $0x28] sm:$0xff]   ;;  %v204_v7 = vld [vmem:[%s299_s1 + $0x30] sm:$0xff]   ;;  %v205_v8 = vld [vmem:[%s299_s1 + $0x38] sm:$0xff]   ;;  %s143_s6 = sshll.u32 %s233_s5, 4  ;;  %s144_s6 = int_to_ptr.vmem [resolvable:$true] %s143_s6 }
   0xa   :  { %178 = vmatpush3.bf16.msra.mxu0 %v200_v3  ;;  %v206_v9 = vld [vmem:[%s298_s0] sm:$0xff]   ;;  %s207_s1 = scalar_lea.vmem %s144_s6, 256  ;;  %p212_p1 = scmp.lt.s32.totalorder %s144_s6, %s144_s6 }
   0xb   :  { %179 = vmatprep.subr.bf16.mxu0 %v231_v1  ;;  %v154_v10 = vld [vmem:[%s300_s2] ss:$0 sm:$0xff]  ;;  %p208_p0 = scmp.ne.s32.totalorder %s144_s6, %s207_s1  ;;  %p213_p2 = scmp.lt.s32.totalorder %s207_s1, %s207_s1 }
   0xd   :  { %p214_p3 = por %p213_p2, %p212_p1 }
   0xe   :  { %180 = vmatpush3.bf16.msra.mxu0 %v201_v4 }
   0xf   :  { %181 = vmatprep.subr.bf16.mxu0 %v231_v1  ;;  %p215_p4 = pnand %p214_p3, %p208_p0 }
  0x12   :  { %182 = vmatpush3.bf16.msra.mxu0 %v202_v5 }
  0x13   :  { %183 = vmatprep.subr.bf16.mxu0 %v231_v1 }
  0x16   :  { %184 = vmatpush3.bf16.msra.mxu0 %v203_v6 }
  0x17   :  { %185 = vmatprep.subr.bf16.mxu0 %v231_v1 }
  0x1a   :  { %186 = vmatpush3.bf16.msra.mxu0 %v204_v7 }
  0x1b   :  { %187 = vmatprep.subr.bf16.mxu0 %v231_v1 }
  0x1e   :  { %188 = vmatpush3.bf16.msra.mxu0 %v205_v8 }
  0x21   :  { %190 = vmatmul.mubr.bf16.vlgmr.msra.gmra.mrb[0].mxu0 %v206_v9 }
  0xf4   :  { %v129_v11 = vpop.f32.mrb[0].mxu0 }
  0xf5   :  { %v130_v12 = vadd.f32 %v154_v10, %v129_v11  ;;  %v191_v13 = vpop.f32.mrb[1].mxu0 }
  0xf6   :  { %v132_v14 = vpop.f32.mrb[2].mxu0 }
  0xf7   :  { %136 = vst [vmem:[#allocation2] sm:$0xff] %v130_v12  ;;  %v133_v15 = vadd.f32 %v154_v10, %v132_v14  ;;  %v192_v16 = vpop.f32.mrb[3].mxu0 }
  0xf9   :  { %137 = vst [vmem:[#allocation2 + $0x8] sm:$0xff] %v133_v15 }
  0xfa   :  { %218 = shalt.err (!%p215_p4)
}
  0xfb   :  { %s219_s7 = scalar_lea.hbm %s301_s3, 256 }
  0xfc   :  { %p220_p5 = scmp.ne.s32.totalorder %s301_s3, %s219_s7  ;;  %p223_p6 = scmp.lt.u32.totalorder %s219_s7, %s301_s3 }
  0xfe   :  { %p225_p7 = pnand %p223_p6, %p220_p5 }
 0x100   :  { %228 = shalt.err (!%p225_p7)
}
 0x101   :  { %s234_s12 = smov 128   ;;  %s235_s13 = smov 8  }
 0x102   :  { %149 = dma.vmem_to_hbm [thread:$0]  %s144_s6, 256, %s301_s3, [#allocation3], %s234_s12, %s234_s12, %s235_s13  }
 0x103   :  { %229 = dma.done.wait [#allocation3], 256  }
 0x104   :  { %230 = vsyncadd [#allocation3], 4294967040 }
 0x105   :  { %153 = vsyncpa [#allocation3], 1 }

// kernel: language_model_forward.3
= control target key start
LH: loop header
LB: loop body
LE: loop exit
PB: predicated region body
PF: predicated region fallthrough
CT: control target
= control target key end

     0   :  { %v613_v1 = vmov 0   ;;  %v614_v2 = vmov 0.0   ;;  %vm615_vm0 = vmmov 0   ;;  %v53_v28 = vlaneseq  ;;  %s776_s1 = inlined_call_operand.vmem [shape: bf16[128,384], index: 1, kind: input, shape index: {}]   ;;  %s777_s0 = inlined_call_operand.vmem [shape: bf16[2,8,128], index: 0, kind: input, shape index: {}]   ;;  %s778_s2 = inlined_call_operand.vmem [shape: f32[1,384], index: 2, kind: input, shape index: {}]   ;;  %s779_s3 = inlined_call_operand.vmem [shape: bf16[2,8,128], index: 3, kind: output, shape index: {}]  }
   0x1   :  { %v561_v0 = vld [vmem:[%s776_s1 + $0x4] ss:$12 sps:$4 sm:$0xff]   ;;  %232 = vmatprep.mubr.bf16.mxu0 %v613_v1  ;;  %518 = vmatprep.subr.bf16.mxu1 %v614_v2  ;;  %19 = vst [vmem:[#allocation2] sm:$0x3] %v614_v2  ;;  %v563_v3 = vld [vmem:[%s776_s1] ss:$12 sps:$4 sm:$0xff]  }
   0x2   :  { %534 = vmatprep.mubr.msk.bf16.mxu1 %vm615_vm0, %v614_v2  ;;  %200 = vmatprep.subr.bf16.mxu0 %v561_v0  ;;  %v564_v4 = vld [vmem:[%s776_s1 + $0x1c] ss:$12 sps:$4 sm:$0xff]   ;;  %v566_v5 = vld [vmem:[%s776_s1 + $0x18] ss:$12 sps:$4 sm:$0xff]   ;;  %v567_v6 = vld [vmem:[%s776_s1 + $0x34] ss:$12 sps:$4 sm:$0xff]  }
   0x3   :  { %201 = vmatpush1.bf16.msra.mxu0 %v563_v3  ;;  %v569_v7 = vld [vmem:[%s776_s1 + $0x30] ss:$12 sps:$4 sm:$0xff]   ;;  %v570_v8 = vld [vmem:[%s776_s1 + $0x4c] ss:$12 sps:$4 sm:$0xff]   ;;  %v572_v9 = vld [vmem:[%s776_s1 + $0x48] ss:$12 sps:$4 sm:$0xff]  }
   0x4   :  { %202 = vmatprep.subr.bf16.mxu0 %v564_v4  ;;  %v585_v10 = vld [vmem:[%s776_s1 + $0x8] ss:$12 sps:$4 sm:$0xff]   ;;  %v573_v11 = vld [vmem:[%s776_s1 + $0x64] ss:$12 sps:$4 sm:$0xff]   ;;  %v586_v12 = vld [vmem:[%s776_s1 + $0x20] ss:$12 sps:$4 sm:$0xff]  }
   0x5   :  { %519 = vmatpush3.bf16.msra.mxu1 %v585_v10  ;;  %v575_v13 = vld [vmem:[%s776_s1 + $0x60] ss:$12 sps:$4 sm:$0xff]   ;;  %v576_v14 = vld [vmem:[%s776_s1 + $0x7c] ss:$12 sps:$4 sm:$0xff]   ;;  %v587_v15 = vld [vmem:[%s776_s1 + $0x38] ss:$12 sps:$4 sm:$0xff]  }
   0x6   :  { %520 = vmatprep.subr.bf16.mxu1 %v614_v2  ;;  %v578_v16 = vld [vmem:[%s776_s1 + $0x78] ss:$12 sps:$4 sm:$0xff]   ;;  %v579_v17 = vld [vmem:[%s776_s1 + $0x94] ss:$12 sps:$4 sm:$0xff]   ;;  %v588_v18 = vld [vmem:[%s776_s1 + $0x50] ss:$12 sps:$4 sm:$0xff]  }
   0x7   :  { %203 = vmatpush1.bf16.msra.mxu0 %v566_v5  ;;  %v581_v19 = vld [vmem:[%s776_s1 + $0x90] ss:$12 sps:$4 sm:$0xff]   ;;  %v582_v20 = vld [vmem:[%s776_s1 + $0xac] ss:$12 sps:$4 sm:$0xff]   ;;  %v589_v21 = vld [vmem:[%s776_s1 + $0x68] ss:$12 sps:$4 sm:$0xff]  }
   0x8   :  { %204 = vmatprep.subr.bf16.mxu0 %v567_v6  ;;  %v584_v22 = vld [vmem:[%s776_s1 + $0xa8] ss:$12 sps:$4 sm:$0xff]   ;;  %v590_v23 = vld [vmem:[%s776_s1 + $0x80] ss:$12 sps:$4 sm:$0xff]   ;;  %v591_v25 = vld [vmem:[%s776_s1 + $0x98] ss:$12 sps:$4 sm:$0xff]  }
   0x9   :  { %521 = vmatpush3.bf16.msra.mxu1 %v586_v12  ;;  %v55_v24 = vld [vmem:[%s777_s0] sm:$0xf]  ;;  %v592_v26 = vld [vmem:[%s776_s1 + $0xb0] ss:$12 sps:$4 sm:$0xff]   ;;  %v495_v27 = vld [vmem:[%s777_s0 + $0x4] sm:$0xf] }
   0xa   :  { %522 = vmatprep.subr.bf16.mxu1 %v614_v2  ;;  %v735_v29 = vshrl.u32 %v53_v28, 7  ;;  %v52_v31 = vld [vmem:[%s778_s2] sm:$0x7] }
   0xb   :  { %205 = vmatpush1.bf16.msra.mxu0 %v569_v7 }
   0xc   :  { %206 = vmatprep.subr.bf16.mxu0 %v570_v8  ;;  %v59_v30 = vsub.s32 0, %v735_v29  ;;  %v63_v32 = vsub.s32 1, %v735_v29  ;;  %v67_v61 = vsub.s32 2, %v735_v29  ;;  %vm298_vm1 = vcmp.lt.s32.totalorder %v735_v29, 1 }
   0xd   :  { %523 = vmatpush3.bf16.msra.mxu1 %v587_v15  ;;  %vm306_vm2 = vcmp.lt.s32.totalorder %v735_v29, 2  ;;  %vm314_vm3 = vcmp.lt.s32.totalorder %v735_v29, 4 }
   0xe   :  { %524 = vmatprep.subr.bf16.mxu1 %v614_v2  ;;  %v60_v33 = vrot.slane %v52_v31, %v59_v30  ;;  %v64_v34 = vrot.slane %v52_v31, %v63_v32  ;;  %v68_v63 = vrot.slane %v52_v31, %v67_v61 }
   0xf   :  { %207 = vmatpush1.bf16.msra.mxu0 %v572_v9 }
  0x10   :  { %208 = vmatprep.subr.bf16.mxu0 %v573_v11 }
  0x11   :  { %525 = vmatpush3.bf16.msra.mxu1 %v588_v18 }
  0x12   :  { %526 = vmatprep.subr.bf16.mxu1 %v614_v2 }
  0x13   :  { %209 = vmatpush1.bf16.msra.mxu0 %v575_v13 }
  0x14   :  { %210 = vmatprep.subr.bf16.mxu0 %v576_v14 }
  0x15   :  { %527 = vmatpush3.bf16.msra.mxu1 %v589_v21 }
  0x16   :  { %528 = vmatprep.subr.bf16.mxu1 %v614_v2 }
  0x17   :  { %211 = vmatpush1.bf16.msra.mxu0 %v578_v16 }
  0x18   :  { %212 = vmatprep.subr.bf16.mxu0 %v579_v17 }
  0x19   :  { %529 = vmatpush3.bf16.msra.mxu1 %v590_v23 }
  0x1a   :  { %530 = vmatprep.subr.bf16.mxu1 %v614_v2 }
  0x1b   :  { %213 = vmatpush1.bf16.msra.mxu0 %v581_v19 }
  0x1c   :  { %214 = vmatprep.subr.bf16.mxu0 %v582_v20 }
  0x1d   :  { %531 = vmatpush3.bf16.msra.mxu1 %v591_v25 }
  0x1e   :  { %532 = vmatprep.subr.bf16.mxu1 %v614_v2 }
  0x1f   :  { %215 = vmatpush1.bf16.msra.mxu0 %v584_v22 }
  0x20   :  { %334 = vmatprep.subr.bf16.mxu0 %v561_v0 }
  0x21   :  { %533 = vmatpush3.bf16.msra.mxu1 %v592_v26 }
  0x22   :  { %233 = vmatmul.mubr.bf16.vlgmr.msra.gmra.mrb[0].mxu0 %v55_v24  ;;  %538 = vmatprep.subr.bf16.mxu1 %v614_v2 }
  0x23   :  { %335 = vmatpush1.bf16.msra.mxu0 %v563_v3  ;;  %366 = vmatprep.mubr.bf16.mxu0 %v613_v1 }
  0x24   :  { %336 = vmatprep.subr.bf16.mxu0 %v564_v4  ;;  %535 = vmatmul.mubr.bf16.vlgmr.msra.gmra.mrb[0].mxu1 %v55_v24 }
  0x25   :  { %539 = vmatpush3.bf16.msra.mxu1 %v585_v10  ;;  %554 = vmatprep.mubr.msk.bf16.mxu1 %vm615_vm0, %v614_v2 }
  0x26   :  { %540 = vmatprep.subr.bf16.mxu1 %v614_v2 }
  0x27   :  { %337 = vmatpush1.bf16.msra.mxu0 %v566_v5 }
  0x28   :  { %338 = vmatprep.subr.bf16.mxu0 %v567_v6 }
  0x29   :  { %541 = vmatpush3.bf16.msra.mxu1 %v586_v12 }
  0x2a   :  { %542 = vmatprep.subr.bf16.mxu1 %v614_v2 }
  0x2b   :  { %339 = vmatpush1.bf16.msra.mxu0 %v569_v7 }
  0x2c   :  { %340 = vmatprep.subr.bf16.mxu0 %v570_v8 }
  0x2d   :  { %543 = vmatpush3.bf16.msra.mxu1 %v587_v15 }
  0x2e   :  { %544 = vmatprep.subr.bf16.mxu1 %v614_v2 }
  0x2f   :  { %341 = vmatpush1.bf16.msra.mxu0 %v572_v9 }
  0x30   :  { %342 = vmatprep.subr.bf16.mxu0 %v573_v11 }
  0x31   :  { %545 = vmatpush3.bf16.msra.mxu1 %v588_v18 }
  0x32   :  { %546 = vmatprep.subr.bf16.mxu1 %v614_v2 }
  0x33   :  { %343 = vmatpush1.bf16.msra.mxu0 %v575_v13 }
  0x34   :  { %344 = vmatprep.subr.bf16.mxu0 %v576_v14 }
  0x35   :  { %547 = vmatpush3.bf16.msra.mxu1 %v589_v21 }
  0x36   :  { %548 = vmatprep.subr.bf16.mxu1 %v614_v2 }
  0x37   :  { %345 = vmatpush1.bf16.msra.mxu0 %v578_v16 }
  0x38   :  { %346 = vmatprep.subr.bf16.mxu0 %v579_v17 }
  0x39   :  { %549 = vmatpush3.bf16.msra.mxu1 %v590_v23 }
  0x3a   :  { %550 = vmatprep.subr.bf16.mxu1 %v614_v2 }
  0x3b   :  { %347 = vmatpush1.bf16.msra.mxu0 %v581_v19 }
  0x3c   :  { %348 = vmatprep.subr.bf16.mxu0 %v582_v20 }
  0x3d   :  { %551 = vmatpush3.bf16.msra.mxu1 %v591_v25 }
  0x3e   :  { %552 = vmatprep.subr.bf16.mxu1 %v614_v2 }
  0x3f   :  { %349 = vmatpush1.bf16.msra.mxu0 %v584_v22 }
  0x41   :  { %553 = vmatpush3.bf16.msra.mxu1 %v592_v26 }
  0x42   :  { %367 = vmatmul.mubr.bf16.vlgmr.msra.gmra.mrb[4].mxu0 %v495_v27 }
  0x44   :  { %555 = vmatmul.mubr.bf16.vlgmr.msra.gmra.mrb[4].mxu1 %v495_v27 }
  0xf5   :  { %v234_v35 = vpop.f32.mrb[0].mxu0 }
  0xf6   :  { %v235_v36 = vadd.f32 %v234_v35, %v60_v33  ;;  %v236_v37 = vpop.f32.mrb[1].mxu0 }
  0xf7   :  { %v237_v38 = vadd.f32 %v236_v37, %v64_v34  ;;  %v238_v39 = vpop.f32.mrb[2].mxu0  ;;  %v275_v43 = vpop.f32.mrb[0].mxu1 }
  0xf8   :  { %v492_v40 = vmul.f32 -1.442695, %v235_v36  ;;  %v239_v41 = vpop.f32.mrb[3].mxu0  ;;  %v536_v44 = vpop.f32.mrb[1].mxu1  ;;  %v276_v2 = vadd.f32 %v275_v43, %v68_v63  ;;  %v494_v36 = vld [vmem:[#allocation2] ss:$0 sm:$0xff] }
  0xf9   :  { %v493_v42 = vmul.f32 -1.442695, %v237_v38  ;;  %v278_v45 = vpop.f32.mrb[2].mxu1 }
  0xfa   :  { %593 = vpow2.f32 %v492_v40  ;;  %v537_v46 = vpop.f32.mrb[3].mxu1 }
  0xfb   :  { %595 = vpow2.f32 %v493_v42 }
 0x104   :  { %v594_v47 = vpop.eup %593 }
 0x105   :  { %v596_v48 = vpop.eup %595  ;;  %v284_v49 = vadd.f32 1.0, %v594_v47 }
 0x106   :  { %v290_v50 = vadd.f32 1.0, %v596_v48 }
 0x107   :  { %597 = vrcp.f32 %v284_v49 }
 0x108   :  { %599 = vrcp.f32 %v290_v50 }
 0x111   :  { %v598_v51 = vpop.eup %597 }
 0x112   :  { %v600_v52 = vpop.eup %599 }
 0x113   :  { %v293_v53 = vadd.f32 %v600_v52, %v598_v51 }
 0x115   :  { %601 = vrcp.f32 %v293_v53  ;;  %v368_v54 = vpop.f32.mrb[4].mxu0 }
 0x116   :  { %v369_v55 = vadd.f32 %v368_v54, %v60_v33  ;;  %v370_v56 = vpop.f32.mrb[5].mxu0 }
 0x117   :  { %v371_v57 = vadd.f32 %v370_v56, %v64_v34  ;;  %v372_v58 = vpop.f32.mrb[6].mxu0  ;;  %v409_v1 = vpop.f32.mrb[4].mxu1 }
 0x118   :  { %v496_v59 = vmul.f32 -1.442695, %v369_v55  ;;  %v373_v60 = vpop.f32.mrb[7].mxu0  ;;  %v556_v4 = vpop.f32.mrb[5].mxu1  ;;  %v410_v43 = vadd.f32 %v409_v1, %v68_v63 }
 0x119   :  { %v497_v62 = vmul.f32 -1.442695, %v371_v57  ;;  %v412_v5 = vpop.f32.mrb[6].mxu1 }
 0x11a   :  { %603 = vpow2.f32 %v496_v59  ;;  %v557_v8 = vpop.f32.mrb[7].mxu1 }
 0x11b   :  { %605 = vpow2.f32 %v497_v62 }
 0x11f   :  { %v602_v0 = vpop.eup %601 }
 0x120   :  { %v295_v3 = vmul.f32 %v602_v0, %v598_v51 }
 0x122   :  { %v296_v6 = vsub.f32 1.0, %v295_v3  ;;  %v299_v7 = vrot.slane %v295_v3, 7 }
 0x124   :  { %v604_v9 = vpop.eup %603  ;;  %v297_v10 = vmul.f32 %v296_v6, %v276_v2  ;;  %v300_v11 = vsel %vm298_vm1, 1.0, %v299_v7  ;;  %v498_v2 = vld [vmem:[#allocation2 + $0x1] ss:$0 sm:$0xff] }
 0x125   :  { %v606_v12 = vpop.eup %605  ;;  %v418_v13 = vadd.f32 1.0, %v604_v9  ;;  %v305_v14 = vmul.f32 %v300_v11, %v295_v3 }
 0x126   :  { %v424_v15 = vadd.f32 1.0, %v606_v12  ;;  %v301_v16 = vrot.slane %v297_v10, 7 }
 0x127   :  { %607 = vrcp.f32 %v418_v13  ;;  %v307_v17 = vrot.slane %v305_v14, 6 }
 0x128   :  { %609 = vrcp.f32 %v424_v15  ;;  %v302_v18 = vsel %vm298_vm1, 0.0, %v301_v16 }
 0x129   :  { %v303_v19 = vmul.f32 %v302_v18, %v295_v3  ;;  %v308_v20 = vsel %vm306_vm2, 1.0, %v307_v17 }
 0x12a   :  { %v313_v21 = vmul.f32 %v308_v20, %v305_v14 }
 0x12b   :  { %v304_v22 = vadd.f32 %v303_v19, %v297_v10 }
 0x12c   :  { %v315_v24 = vrot.slane %v313_v21, 4 }
 0x12d   :  { %v309_v23 = vrot.slane %v304_v22, 6 }
 0x12e   :  { %v316_v31 = vsel %vm314_vm3, 1.0, %v315_v24 }
 0x12f   :  { %v310_v25 = vsel %vm306_vm2, 0.0, %v309_v23  ;;  %v321_v34 = vmul.f32 %v316_v31, %v313_v21 }
 0x130   :  { %v311_v26 = vmul.f32 %v310_v25, %v305_v14 }
 0x131   :  { %v608_v27 = vpop.eup %607  ;;  %v327_v39 = vmul.f32 %v494_v36, %v321_v34 }
 0x132   :  { %v610_v28 = vpop.eup %609  ;;  %v312_v30 = vadd.f32 %v311_v26, %v304_v22 }
 0x133   :  { %v427_v32 = vadd.f32 %v610_v28, %v608_v27 }
 0x134   :  { %v317_v33 = vrot.slane %v312_v30, 4 }
 0x135   :  { %611 = vrcp.f32 %v427_v32 }
 0x136   :  { %v318_v35 = vsel %vm314_vm3, 0.0, %v317_v33 }
 0x137   :  { %v319_v37 = vmul.f32 %v318_v35, %v313_v21 }
 0x139   :  { %v320_v38 = vadd.f32 %v319_v37, %v312_v30 }
 0x13b   :  { %v328_v40 = vadd.f32 %v327_v39, %v320_v38 }
 0x13d   :  { %329 = vst [vmem:[#allocation2 - $0x7] sm:$0x80] %v328_v40  ;;  %v330_v41 = vpack.c.bf16 %v328_v40, %v328_v40 }
 0x13f   :  { %v612_v42 = vpop.eup %611  ;;  %331 = vst [vmem:[%s779_s3] sm:$0xf] %v330_v41 }
 0x140   :  { %v429_v44 = vmul.f32 %v612_v42, %v608_v27 }
 0x142   :  { %v430_v45 = vsub.f32 1.0, %v429_v44  ;;  %v432_v46 = vrot.slane %v429_v44, 7 }
 0x144   :  { %v431_v47 = vmul.f32 %v430_v45, %v410_v43  ;;  %v433_v48 = vsel %vm298_vm1, 1.0, %v432_v46 }
 0x145   :  { %v438_v49 = vmul.f32 %v433_v48, %v429_v44 }
 0x146   :  { %v434_v50 = vrot.slane %v431_v47, 7 }
 0x147   :  { %v439_v51 = vrot.slane %v438_v49, 6 }
 0x148   :  { %v435_v52 = vsel %vm298_vm1, 0.0, %v434_v50 }
 0x149   :  { %v436_v53 = vmul.f32 %v435_v52, %v429_v44  ;;  %v440_v54 = vsel %vm306_vm2, 1.0, %v439_v51 }
 0x14a   :  { %v445_v55 = vmul.f32 %v440_v54, %v438_v49 }
 0x14b   :  { %v437_v56 = vadd.f32 %v436_v53, %v431_v47 }
 0x14c   :  { %v446_v58 = vrot.slane %v445_v55, 4 }
 0x14d   :  { %v441_v57 = vrot.slane %v437_v56, 6 }
 0x14e   :  { %v447_v62 = vsel %vm314_vm3, 1.0, %v446_v58 }
 0x14f   :  { %v442_v59 = vsel %vm306_vm2, 0.0, %v441_v57  ;;  %v452_v0 = vmul.f32 %v447_v62, %v445_v55 }
 0x150   :  { %v443_v60 = vmul.f32 %v442_v59, %v438_v49 }
 0x151   :  { %v458_v5 = vmul.f32 %v498_v2, %v452_v0 }
 0x152   :  { %v444_v61 = vadd.f32 %v443_v60, %v437_v56 }
 0x154   :  { %v448_v63 = vrot.slane %v444_v61, 4 }
 0x156   :  { %v449_v1 = vsel %vm314_vm3, 0.0, %v448_v63 }
 0x157   :  { %v450_v3 = vmul.f32 %v449_v1, %v445_v55 }
 0x159   :  { %v451_v4 = vadd.f32 %v450_v3, %v444_v61 }
 0x15b   :  { %v459_v6 = vadd.f32 %v458_v5, %v451_v4 }
 0x15d   :  { %460 = vst [vmem:[#allocation2 - $0x6] sm:$0x80] %v459_v6  ;;  %v461_v7 = vpack.c.bf16 %v459_v6, %v459_v6 }
 0x15f   :  { %499 = vst [vmem:[%s779_s3 + $0x4] sm:$0xf] %v461_v7 }

</bundles_post_ra>
